<compile_context>
chip_gen: v5e
topology: v5e:2x2
jax: 0.10.0
libtpu: 0.0.40
codegen_flags: <defaults>
</compile_context>

<pallas_src>
import numpy as np
import jax
import jax.numpy as jnp
from jax.experimental import pallas as pl
from jax.experimental.pallas import tpu as pltpu


def _dft_mats(n, sign):
    k = jnp.arange(n, dtype=jnp.float32)
    ang = sign * 2.0 * jnp.pi * jnp.outer(k, k) / n
    return jnp.cos(ang).astype(jnp.float32), jnp.sin(ang).astype(jnp.float32)


def _pick_block_images(nc, h, target_rows=512):
    """Largest divisor of nc such that the block stays sublane-aligned, within
    `target_rows` image rows, and (when possible) leaves >= 2 grid steps so the
    grid can still be sharded across 2 TensorCores (v7x)."""
    best = None
    for d in range(1, nc + 1):
        if nc % d != 0:
            continue
        if (d * h) % 8 != 0 and d != nc:
            continue
        if d * h > target_rows and d != 1:
            continue
        if nc >= 2 and nc // d < 2:
            continue
        best = d
    if best is None:
        best = nc  # block == full array is always a legal BlockSpec
    return best


def _ri_deconv_kernel(y_ref, fwcat_ref, fhs_ref, ihs_ref, iwreal_ref,
                      gre_ref, gim_ref, o_ref):
    H = fhs_ref.shape[1]          # FHS is (2H, H)
    W = y_ref.shape[1]
    B = y_ref.shape[0] // H       # images per block
    BW = B * W
    cdt = fwcat_ref.dtype         # MXU compute dtype (f32 default, bf16 optional)

    # ---- stage 1: forward W-transform, all B images in one matmul -----------
    #   A = [ Y @ fw_re | Y @ fw_im ]   rows = batch*H, lanes = [re | im]
    a = jnp.dot(y_ref[...], fwcat_ref[...],
                preferred_element_type=jnp.float32)          # (B*H, 2W) f32

    # ---- corner turn: batch moves from sublanes into lanes -------------------
    #   RI = [ C1_re,0 | .. | C1_re,B-1 | C1_im,0 | .. | C1_im,B-1 ]  (H, 2*B*W)
    re_parts = [a[b * H:(b + 1) * H, :W] for b in range(B)]
    im_parts = [a[b * H:(b + 1) * H, W:] for b in range(B)]
    ri = jnp.concatenate(re_parts + im_parts, axis=1)        # (H, 2*B*W) f32

    # ---- stage 2: forward H-transform (single row-stacked matmul) ------------
    #   P = [fh_re ; fh_im] @ RI   -> all four re/im product blocks at once
    p = jnp.dot(fhs_ref[...], ri.astype(cdt),
                preferred_element_type=jnp.float32)          # (2H, 2*B*W) f32
    c_re = p[:H, :BW] - p[H:, BW:]                           # (H, B*W)
    c_im = p[:H, BW:] + p[H:, :BW]                           # (H, B*W)

    # ---- stage 3: regularized-inverse (Wiener) filter, elementwise in f32 ----
    g_re = gre_ref[...]
    g_im = gim_ref[...]
    z_re = c_re * g_re - c_im * g_im
    z_im = c_re * g_im + c_im * g_re

    # ---- stage 4: inverse H-transform (single row-stacked matmul) ------------
    q = jnp.dot(ihs_ref[...],
                jnp.concatenate([z_re, z_im], axis=1).astype(cdt),
                preferred_element_type=jnp.float32)          # (2H, 2*B*W) f32
    w_re = q[:H, :BW] - q[H:, BW:]                           # (H, B*W)
    w_im = q[:H, BW:] + q[H:, :BW]                           # (H, B*W)

    # ---- corner turn back: batch returns to sublanes, lanes = [re | im] ------
    rows = [jnp.concatenate([w_re[:, b * W:(b + 1) * W],
                             w_im[:, b * W:(b + 1) * W]], axis=1)
            for b in range(B)]
    wback = jnp.concatenate(rows, axis=0)                    # (B*H, 2W)

    # ---- stage 5: inverse W-transform, keep real part only (one matmul) ------
    x = jnp.dot(wback.astype(cdt), iwreal_ref[...],
                preferred_element_type=jnp.float32)          # (B*H, W)

    o_ref[...] = x.astype(o_ref.dtype)


def bm3d_deblur_ri(y, psf, sigma_psd, *, compute_dtype=jnp.float32,
                   block_images=None):
    """Regularized-inverse deblurring of an NCHW batch with a single PSF."""
    N, C, H, W = y.shape
    NC = N * C
    out_dtype = y.dtype
    yflat = y.reshape(NC * H, W).astype(compute_dtype)

    # ---- host-side parameter setup (plain JAX glue) --------------------------
    fh_re, fh_im = _dft_mats(H, -1.0)
    fw_re, fw_im = _dft_mats(W, -1.0)
    ih_re, ih_im = _dft_mats(H, +1.0)
    iw_re, iw_im = _dft_mats(W, +1.0)
    ih_re, ih_im = ih_re / H, ih_im / H
    iw_re, iw_im = iw_re / W, iw_im / W

    fwcat = jnp.concatenate([fw_re, fw_im], axis=1).astype(compute_dtype)   # (W, 2W)
    fhs = jnp.concatenate([fh_re, fh_im], axis=0).astype(compute_dtype)     # (2H, H)
    ihs = jnp.concatenate([ih_re, ih_im], axis=0).astype(compute_dtype)     # (2H, H)
    iwreal = jnp.concatenate([iw_re, -iw_im], axis=0).astype(compute_dtype)  # (2W, W)

    # Regularized-inverse filter G = conj(K) / (|K|^2 + sigma_psd^2)
    kh, kw = psf.shape
    pad = jnp.zeros((H, W), jnp.float32).at[:kh, :kw].set(psf.astype(jnp.float32))
    pad = jnp.roll(pad, shift=(-(kh // 2), -(kw // 2)), axis=(0, 1))  # center at origin
    K = jnp.fft.fft2(pad)
    denom = jnp.abs(K) ** 2 + jnp.float32(sigma_psd) ** 2
    G = jnp.conj(K) / denom
    g_re = jnp.real(G).astype(jnp.float32)                                   # (H, W)
    g_im = jnp.imag(G).astype(jnp.float32)

    B = block_images if block_images is not None else _pick_block_images(NC, H)
    assert NC % B == 0
    gre_l = jnp.tile(g_re, (1, B))                                           # (H, B*W)
    gim_l = jnp.tile(g_im, (1, B))

    # ---- VMEM footprint estimate -> explicit vmem limit ----------------------
    blk_in = B * H * W * yflat.dtype.itemsize
    blk_out = B * H * W * np.dtype(out_dtype).itemsize
    const_bytes = sum(int(a.size) * a.dtype.itemsize
                      for a in (fwcat, fhs, ihs, iwreal, gre_l, gim_l))
    inter_bytes = 10 * B * H * 2 * W * 4                      # live f32 temporaries
    est = 2 * (blk_in + blk_out) + 2 * const_bytes + inter_bytes
    vmem_limit = int(min(max(4 * est, 16 * 2 ** 20), 32 * 2 ** 20))

    # ---- Pallas call: B images per grid step ---------------------------------
    img_spec = pl.BlockSpec((B * H, W), lambda i: (i, 0))

    def _const(shape):
        return pl.BlockSpec(shape, lambda i: (0, 0))

    out = pl.pallas_call(
        _ri_deconv_kernel,
        out_shape=jax.ShapeDtypeStruct((NC * H, W), out_dtype),
        grid_spec=pltpu.PrefetchScalarGridSpec(
            num_scalar_prefetch=0,
            grid=(NC // B,),
            in_specs=[
                img_spec,
                _const((W, 2 * W)),        # forward W-transform  [fw_re | fw_im]
                _const((2 * H, H)),        # forward H-transform  [fh_re ; fh_im]
                _const((2 * H, H)),        # inverse H-transform  [ih_re ; ih_im]
                _const((2 * W, W)),        # inverse W-transform  [iw_re ; -iw_im]
                _const((H, B * W)),        # filter real part (lane-tiled over B)
                _const((H, B * W)),        # filter imag part
            ],
            out_specs=img_spec,
        ),
        compiler_params=pltpu.CompilerParams(
            dimension_semantics=("parallel",),
            vmem_limit_bytes=vmem_limit),
    )(yflat, fwcat, fhs, ihs, iwreal, gre_l, gim_l)

    return out.reshape(N, C, H, W)


def _gaussian_psf(size=5, sigma=1.0):
    ax = np.arange(size) - (size - 1) / 2.0
    g = np.exp(-(ax[:, None] ** 2 + ax[None, :] ** 2) / (2.0 * sigma ** 2))
    g = g / g.sum()
    return jnp.asarray(g, dtype=jnp.float32)


if __name__ == "__main__":
    key = jax.random.PRNGKey(0)
    N, C, H, W = 2, 4, 16, 16
    y = jax.random.uniform(key, (N, C, H, W), dtype=jnp.float32)

    # physics.kernel ~ (1, 1, 5, 5) blur kernel; deterministic Gaussian init
    psf = _gaussian_psf(5, 1.0)
    sigma_psd = 0.05

    x_hat = jax.block_until_ready(bm3d_deblur_ri(y, psf, sigma_psd))

    # sanity check against a pure-JAX FFT reference of the same deconvolution stage
    kh, kw = psf.shape
    pad = jnp.zeros((H, W), jnp.float32).at[:kh, :kw].set(psf)
    pad = jnp.roll(pad, shift=(-(kh // 2), -(kw // 2)), axis=(0, 1))
    K = jnp.fft.fft2(pad)
    G = jnp.conj(K) / (jnp.abs(K) ** 2 + sigma_psd ** 2)
    ref = jnp.real(jnp.fft.ifft2(jnp.fft.fft2(y.reshape(N * C, H, W)) * G[None]))
    ref = ref.reshape(N, C, H, W)

    assert x_hat.shape == y.shape and x_hat.dtype == y.dtype
    np.testing.assert_allclose(np.asarray(x_hat), np.asarray(ref), atol=2e-3, rtol=2e-3)

    # bf16-MXU path (perf-review item): same kernel, bf16 matmul operands with f32
    # accumulation; looser tolerance since the check compares against an f32 FFT.
    x_bf16 = jax.block_until_ready(
        bm3d_deblur_ri(y, psf, sigma_psd, compute_dtype=jnp.bfloat16))
    np.testing.assert_allclose(np.asarray(x_bf16), np.asarray(ref), atol=0.25, rtol=0.25)

    print("KERNEL_OK")
</pallas_src>

<mosaic_0001>
module attributes {stable_mosaic.version = 11 : i64} {
  func.func @_ri_deconv_kernel(%arg0: i32, %arg1: memref<64x16xf32, #tpu.memory_space<vmem>>, %arg2: memref<16x32xf32, #tpu.memory_space<vmem>>, %arg3: memref<32x16xf32, #tpu.memory_space<vmem>>, %arg4: memref<32x16xf32, #tpu.memory_space<vmem>>, %arg5: memref<32x16xf32, #tpu.memory_space<vmem>>, %arg6: memref<16x64xf32, #tpu.memory_space<vmem>>, %arg7: memref<16x64xf32, #tpu.memory_space<vmem>>, %arg8: memref<64x16xf32, #tpu.memory_space<vmem>>) attributes {dimension_semantics = [#tpu.dimension_semantics<parallel>], iteration_bounds = array<i64: 2>, scalar_prefetch = 0 : i64, scratch_operands = 0 : i64, tpu.core_type = #tpu.core_type<tc>, window_params = [{transform_indices = @transform_0, window_bounds = array<i64: 64, 16>}, {pipeline_mode = #tpu.pipeline_mode<synchronous>, transform_indices = @transform_1, window_bounds = array<i64: 16, 32>}, {pipeline_mode = #tpu.pipeline_mode<synchronous>, transform_indices = @transform_2, window_bounds = array<i64: 32, 16>}, {pipeline_mode = #tpu.pipeline_mode<synchronous>, transform_indices = @transform_3, window_bounds = array<i64: 32, 16>}, {pipeline_mode = #tpu.pipeline_mode<synchronous>, transform_indices = @transform_4, window_bounds = array<i64: 32, 16>}, {pipeline_mode = #tpu.pipeline_mode<synchronous>, transform_indices = @transform_5, window_bounds = array<i64: 16, 64>}, {pipeline_mode = #tpu.pipeline_mode<synchronous>, transform_indices = @transform_6, window_bounds = array<i64: 16, 64>}, {transform_indices = @transform_7, window_bounds = array<i64: 64, 16>}]} {
    %c0 = arith.constant 0 : index
    %c0_0 = arith.constant 0 : index
    %0 = vector.load %arg1[%c0, %c0_0] : memref<64x16xf32, #tpu.memory_space<vmem>>, vector<64x16xf32>
    %c0_1 = arith.constant 0 : index
    %c0_2 = arith.constant 0 : index
    %1 = vector.load %arg2[%c0_1, %c0_2] : memref<16x32xf32, #tpu.memory_space<vmem>>, vector<16x32xf32>
    %cst = arith.constant dense<0.000000e+00> : vector<64x32xf32>
    %2 = tpu.matmul %0, %1, %cst {dimension_numbers = #tpu.dot_dimension_numbers<[1], [0], [0], [1], [0, 0, 1, 1], [], []>} : vector<64x16xf32>, vector<16x32xf32>, vector<64x32xf32> -> vector<64x32xf32>
    %3 = vector.extract_strided_slice %2 {offsets = [0, 0], sizes = [16, 16], strides = [1, 1]} : vector<64x32xf32> to vector<16x16xf32>
    %4 = vector.extract_strided_slice %2 {offsets = [16, 0], sizes = [16, 16], strides = [1, 1]} : vector<64x32xf32> to vector<16x16xf32>
    %5 = vector.extract_strided_slice %2 {offsets = [32, 0], sizes = [16, 16], strides = [1, 1]} : vector<64x32xf32> to vector<16x16xf32>
    %6 = vector.extract_strided_slice %2 {offsets = [48, 0], sizes = [16, 16], strides = [1, 1]} : vector<64x32xf32> to vector<16x16xf32>
    %7 = vector.extract_strided_slice %2 {offsets = [0, 16], sizes = [16, 16], strides = [1, 1]} : vector<64x32xf32> to vector<16x16xf32>
    %8 = vector.extract_strided_slice %2 {offsets = [16, 16], sizes = [16, 16], strides = [1, 1]} : vector<64x32xf32> to vector<16x16xf32>
    %9 = vector.extract_strided_slice %2 {offsets = [32, 16], sizes = [16, 16], strides = [1, 1]} : vector<64x32xf32> to vector<16x16xf32>
    %10 = vector.extract_strided_slice %2 {offsets = [48, 16], sizes = [16, 16], strides = [1, 1]} : vector<64x32xf32> to vector<16x16xf32>
    %11 = tpu.concatenate %3, %4, %5, %6, %7, %8, %9, %10 in 1 : vector<16x16xf32>, vector<16x16xf32>, vector<16x16xf32>, vector<16x16xf32>, vector<16x16xf32>, vector<16x16xf32>, vector<16x16xf32>, vector<16x16xf32> -> vector<16x128xf32>
    %c0_3 = arith.constant 0 : index
    %c0_4 = arith.constant 0 : index
    %12 = vector.load %arg3[%c0_3, %c0_4] : memref<32x16xf32, #tpu.memory_space<vmem>>, vector<32x16xf32>
    %cst_5 = arith.constant dense<0.000000e+00> : vector<32x128xf32>
    %13 = tpu.matmul %12, %11, %cst_5 {dimension_numbers = #tpu.dot_dimension_numbers<[1], [0], [0], [1], [0, 0, 1, 1], [], []>} : vector<32x16xf32>, vector<16x128xf32>, vector<32x128xf32> -> vector<32x128xf32>
    %14 = vector.extract_strided_slice %13 {offsets = [0, 0], sizes = [16, 64], strides = [1, 1]} : vector<32x128xf32> to vector<16x64xf32>
    %15 = vector.extract_strided_slice %13 {offsets = [16, 64], sizes = [16, 64], strides = [1, 1]} : vector<32x128xf32> to vector<16x64xf32>
    %16 = arith.subf %14, %15 : vector<16x64xf32>
    %17 = vector.extract_strided_slice %13 {offsets = [0, 64], sizes = [16, 64], strides = [1, 1]} : vector<32x128xf32> to vector<16x64xf32>
    %18 = vector.extract_strided_slice %13 {offsets = [16, 0], sizes = [16, 64], strides = [1, 1]} : vector<32x128xf32> to vector<16x64xf32>
    %19 = arith.addf %17, %18 : vector<16x64xf32>
    %c0_6 = arith.constant 0 : index
    %c0_7 = arith.constant 0 : index
    %20 = vector.load %arg6[%c0_6, %c0_7] : memref<16x64xf32, #tpu.memory_space<vmem>>, vector<16x64xf32>
    %c0_8 = arith.constant 0 : index
    %c0_9 = arith.constant 0 : index
    %21 = vector.load %arg7[%c0_8, %c0_9] : memref<16x64xf32, #tpu.memory_space<vmem>>, vector<16x64xf32>
    %22 = arith.mulf %16, %20 : vector<16x64xf32>
    %23 = arith.mulf %19, %21 : vector<16x64xf32>
    %24 = arith.subf %22, %23 : vector<16x64xf32>
    %25 = arith.mulf %16, %21 : vector<16x64xf32>
    %26 = arith.mulf %19, %20 : vector<16x64xf32>
    %27 = arith.addf %25, %26 : vector<16x64xf32>
    %c0_10 = arith.constant 0 : index
    %c0_11 = arith.constant 0 : index
    %28 = vector.load %arg4[%c0_10, %c0_11] : memref<32x16xf32, #tpu.memory_space<vmem>>, vector<32x16xf32>
    %29 = tpu.concatenate %24, %27 in 1 : vector<16x64xf32>, vector<16x64xf32> -> vector<16x128xf32>
    %cst_12 = arith.constant dense<0.000000e+00> : vector<32x128xf32>
    %30 = tpu.matmul %28, %29, %cst_12 {dimension_numbers = #tpu.dot_dimension_numbers<[1], [0], [0], [1], [0, 0, 1, 1], [], []>} : vector<32x16xf32>, vector<16x128xf32>, vector<32x128xf32> -> vector<32x128xf32>
    %31 = vector.extract_strided_slice %30 {offsets = [0, 0], sizes = [16, 64], strides = [1, 1]} : vector<32x128xf32> to vector<16x64xf32>
    %32 = vector.extract_strided_slice %30 {offsets = [16, 64], sizes = [16, 64], strides = [1, 1]} : vector<32x128xf32> to vector<16x64xf32>
    %33 = arith.subf %31, %32 : vector<16x64xf32>
    %34 = vector.extract_strided_slice %30 {offsets = [0, 64], sizes = [16, 64], strides = [1, 1]} : vector<32x128xf32> to vector<16x64xf32>
    %35 = vector.extract_strided_slice %30 {offsets = [16, 0], sizes = [16, 64], strides = [1, 1]} : vector<32x128xf32> to vector<16x64xf32>
    %36 = arith.addf %34, %35 : vector<16x64xf32>
    %37 = vector.extract_strided_slice %33 {offsets = [0, 0], sizes = [16, 16], strides = [1, 1]} : vector<16x64xf32> to vector<16x16xf32>
    %38 = vector.extract_strided_slice %36 {offsets = [0, 0], sizes = [16, 16], strides = [1, 1]} : vector<16x64xf32> to vector<16x16xf32>
    %39 = tpu.concatenate %37, %38 in 1 : vector<16x16xf32>, vector<16x16xf32> -> vector<16x32xf32>
    %40 = vector.extract_strided_slice %33 {offsets = [0, 16], sizes = [16, 16], strides = [1, 1]} : vector<16x64xf32> to vector<16x16xf32>
    %41 = vector.extract_strided_slice %36 {offsets = [0, 16], sizes = [16, 16], strides = [1, 1]} : vector<16x64xf32> to vector<16x16xf32>
    %42 = tpu.concatenate %40, %41 in 1 : vector<16x16xf32>, vector<16x16xf32> -> vector<16x32xf32>
    %43 = vector.extract_strided_slice %33 {offsets = [0, 32], sizes = [16, 16], strides = [1, 1]} : vector<16x64xf32> to vector<16x16xf32>
    %44 = vector.extract_strided_slice %36 {offsets = [0, 32], sizes = [16, 16], strides = [1, 1]} : vector<16x64xf32> to vector<16x16xf32>
    %45 = tpu.concatenate %43, %44 in 1 : vector<16x16xf32>, vector<16x16xf32> -> vector<16x32xf32>
    %46 = vector.extract_strided_slice %33 {offsets = [0, 48], sizes = [16, 16], strides = [1, 1]} : vector<16x64xf32> to vector<16x16xf32>
    %47 = vector.extract_strided_slice %36 {offsets = [0, 48], sizes = [16, 16], strides = [1, 1]} : vector<16x64xf32> to vector<16x16xf32>
    %48 = tpu.concatenate %46, %47 in 1 : vector<16x16xf32>, vector<16x16xf32> -> vector<16x32xf32>
    %49 = tpu.concatenate %39, %42, %45, %48 in 0 : vector<16x32xf32>, vector<16x32xf32>, vector<16x32xf32>, vector<16x32xf32> -> vector<64x32xf32>
    %c0_13 = arith.constant 0 : index
    %c0_14 = arith.constant 0 : index
    %50 = vector.load %arg5[%c0_13, %c0_14] : memref<32x16xf32, #tpu.memory_space<vmem>>, vector<32x16xf32>
    %cst_15 = arith.constant dense<0.000000e+00> : vector<64x16xf32>
    %51 = tpu.matmul %49, %50, %cst_15 {dimension_numbers = #tpu.dot_dimension_numbers<[1], [0], [0], [1], [0, 0, 1, 1], [], []>} : vector<64x32xf32>, vector<32x16xf32>, vector<64x16xf32> -> vector<64x16xf32>
    %c0_16 = arith.constant 0 : index
    %c0_17 = arith.constant 0 : index
    %52 = vector.load %arg8[%c0_16, %c0_17] : memref<64x16xf32, #tpu.memory_space<vmem>>, vector<64x16xf32>
    tpu.vector_store %arg8[%c0_16, %c0_17], %51 {strides = array<i32>} : memref<64x16xf32, #tpu.memory_space<vmem>>, vector<64x16xf32>,
    return
  }
  func.func @transform_0(%arg0: i32) -> (i32, i32) {
    %c0_i32 = arith.constant 0 : i32
    %c0_i32_0 = arith.constant 0 : i32
    return %arg0, %c0_i32 : i32, i32
  }
  func.func @transform_1(%arg0: i32) -> (i32, i32) {
    %c0_i32 = arith.constant 0 : i32
    %c0_i32_0 = arith.constant 0 : i32
    %c0_i32_1 = arith.constant 0 : i32
    return %c0_i32, %c0_i32_0 : i32, i32
  }
  func.func @transform_2(%arg0: i32) -> (i32, i32) {
    %c0_i32 = arith.constant 0 : i32
    %c0_i32_0 = arith.constant 0 : i32
    %c0_i32_1 = arith.constant 0 : i32
    return %c0_i32, %c0_i32_0 : i32, i32
  }
  func.func @transform_3(%arg0: i32) -> (i32, i32) {
    %c0_i32 = arith.constant 0 : i32
    %c0_i32_0 = arith.constant 0 : i32
    %c0_i32_1 = arith.constant 0 : i32
    return %c0_i32, %c0_i32_0 : i32, i32
  }
  func.func @transform_4(%arg0: i32) -> (i32, i32) {
    %c0_i32 = arith.constant 0 : i32
    %c0_i32_0 = arith.constant 0 : i32
    %c0_i32_1 = arith.constant 0 : i32
    return %c0_i32, %c0_i32_0 : i32, i32
  }
  func.func @transform_5(%arg0: i32) -> (i32, i32) {
    %c0_i32 = arith.constant 0 : i32
    %c0_i32_0 = arith.constant 0 : i32
    %c0_i32_1 = arith.constant 0 : i32
    return %c0_i32, %c0_i32_0 : i32, i32
  }
  func.func @transform_6(%arg0: i32) -> (i32, i32) {
    %c0_i32 = arith.constant 0 : i32
    %c0_i32_0 = arith.constant 0 : i32
    %c0_i32_1 = arith.constant 0 : i32
    return %c0_i32, %c0_i32_0 : i32, i32
  }
  func.func @transform_7(%arg0: i32) -> (i32, i32) {
    %c0_i32 = arith.constant 0 : i32
    %c0_i32_0 = arith.constant 0 : i32
    return %arg0, %c0_i32 : i32, i32
  }
}

</mosaic_0001>

<bundles_post_ra>
// kernel: tpu_custom_call.1
= control target key start
LH: loop header
LB: loop body
LE: loop exit
PB: predicated region body
PF: predicated region fallthrough
CT: control target
= control target key end

     0   :  { %s938_s24 = smov 0   ;;  %s1103_s0 = inlined_call_operand.vmem [shape: f32[128,16], index: 0, kind: input, shape index: {}]   ;;  %s1104_s1 = inlined_call_operand.vmem [shape: f32[16,32], index: 1, kind: input, shape index: {}]   ;;  %s1105_s2 = inlined_call_operand.vmem [shape: f32[32,16], index: 2, kind: input, shape index: {}]   ;;  %s1106_s3 = inlined_call_operand.vmem [shape: f32[32,16], index: 3, kind: input, shape index: {}]   ;;  %s1107_s4 = inlined_call_operand.vmem [shape: f32[32,16], index: 4, kind: input, shape index: {}]   ;;  %s1108_s5 = inlined_call_operand.vmem [shape: f32[16,64], index: 5, kind: input, shape index: {}]   ;;  %s1109_s6 = inlined_call_operand.vmem [shape: f32[16,64], index: 6, kind: input, shape index: {}]   ;;  %s1110_s7 = inlined_call_operand.vmem [shape: f32[128,16], index: 7, kind: output, shape index: {}]  }
   0x1 LB: > { %s787_s25 = sadd.s32 4294967295, %s889_s24   ;;  %p791_p0 = scmp.ge.s32.totalorder %s889_s24, 1  ;;  %s889_s24 = sphi %s938_s24, %s17_s24  }
   0x2   : > { %p238_p1 = scmp.lt.s32.totalorder %s889_s24, 3 }
   0x4   : > { %p239_p2 = pnand %p791_p0, %p238_p1 }
   0x5   : > { %s792_s30 = sshll.u32 (!%p239_p2), %s787_s25, 3  ;;  %s891_s12 = smov (!%p239_p2), 48  }
   0x6   : > { %242 = sbr.rel (%p239_p2) target bundleno = 1354 (0x54a), region = 48  ;;  %p271_p3 = scmp.lt.s32.totalorder (!%p239_p2), %s792_s30, 15 }
   0x7   : > { %s892_s13 = smov (!%p239_p2), 64   ;;  %s893_s14 = smov (!%p239_p2), 16  }
   0x8   : > { %s894_s15 = smov (!%p239_p2), 80   ;;  %s895_s16 = smov (!%p239_p2), 32  }
   0x9   : > { %s896_s17 = smov (!%p239_p2), 96   ;;  %s897_s28 = smov (!%p239_p2), 112  }
   0xb   : > { %v291_v0 = vld [vmem:[%s1104_s1 + $0x8] sm:$0xff]  ;;  %v290_v1 = vld [vmem:[%s1104_s1] sm:$0xff]  ;;  %s1112_s30 = smov (!%p271_p3, %s792_s30), 15  ;;  %vm292_vm0 = vcmask 130048   ;;  %vm410_vm1 = vcmask 261120   ;;  %vm413_vm2 = vcmask 392192  }
   0xc   : > { %331 = vmatpush.msra.mxu0 %v291_v0  ;;  %822 = vmatpush.msra.mxu2 %v291_v0  ;;  %s793_s8 = sshll.u32 %s1112_s30, 3  ;;  %vm416_vm3 = vcmask 523264   ;;  %vm419_vm4 = vcmask 654336   ;;  %vm422_vm5 = vcmask 785408   ;;  %vm425_vm6 = vcmask 916480   ;;  %v486_v47 = vld [vmem:[%s1108_s5 + $0x8] sm:$0xff] }
   0xd   : > { %s274_s11 = scalar_lea.vmem %s1103_s0, %s793_s8  ;;  %v428_v58 = vld [vmem:[%s1105_s2] sm:$0xff]  ;;  %v429_v61 = vld [vmem:[%s1105_s2 + $0x8] sm:$0xff]  ;;  %v430_v62 = vld [vmem:[%s1105_s2 + $0x10] sm:$0xff]  ;;  %s280_s18 = scalar_lea.vmem %s1110_s7, %s793_s8 }
   0xe   : > { %332 = vmatpush.msra.mxu0 %v290_v1  ;;  %823 = vmatpush.msra.mxu2 %v290_v1  ;;  %v282_v2 = vld [vmem:[%s274_s11] sm:$0xff]  ;;  %v289_v3 = vld [vmem:[%s274_s11 + $0x38] sm:$0xff]  ;;  %v283_v4 = vld [vmem:[%s274_s11 + $0x8] sm:$0xff] }
   0xf   : > { %796 = vmatmul.msk.f32.vlgmr.msra.gmra.mxu0 %vm292_vm0, %v282_v2  ;;  %803 = vmatmul.msk.f32.vlgmr.msra.gmra.mxu2 %vm292_vm0, %v289_v3  ;;  %v284_v5 = vld [vmem:[%s274_s11 + $0x10] sm:$0xff]  ;;  %v285_v6 = vld [vmem:[%s274_s11 + $0x18] sm:$0xff]  ;;  %v286_v7 = vld [vmem:[%s274_s11 + $0x20] sm:$0xff] }
  0x10   : > { %v287_v8 = vld [vmem:[%s274_s11 + $0x28] sm:$0xff]  ;;  %v288_v9 = vld [vmem:[%s274_s11 + $0x30] sm:$0xff]  ;;  %v487_v60 = vld [vmem:[%s1109_s6] sm:$0xff] }
  0x11   : > { %v431_v63 = vld [vmem:[%s1105_s2 + $0x18] sm:$0xff]  ;;  %v488_v3 = vld [vmem:[%s1109_s6 + $0x8] sm:$0xff] }
  0x17   : > { %797 = vmatmul.msk.f32.gmra.mxu0 %vm292_vm0, %v283_v4 }
  0x1f   : > { %798 = vmatmul.msk.f32.gmra.mxu0 %vm292_vm0, %v284_v5  ;;  %v485_v5 = vld [vmem:[%s1108_s5] sm:$0xff] }
  0x27   : > { %799 = vmatmul.msk.f32.gmra.mxu0 %vm292_vm0, %v285_v6 }
  0x2f   : > { %800 = vmatmul.msk.f32.gmra.mxu0 %vm292_vm0, %v286_v7 }
  0x37   : > { %801 = vmatmul.msk.f32.gmra.mxu0 %vm292_vm0, %v287_v8 }
  0x3f   : > { %802 = vmatmul.msk.f32.gmra.mxu0 %vm292_vm0, %v288_v9 }
  0x8c   : > { %v334_v10 = vpop.f32.mrf.mxu0 }
  0x92   : > { %v355_v11 = vpop.f32.mrf.mxu2 }
  0x94   : > { %v337_v12 = vpop.f32.mrf.mxu0 }
  0x95   : > { %v843_v13 = vpack.i.bf16 %v337_v12, %v355_v11 }
  0x97   : > { %844 = vrot.lane.b32.xlu1 %v843_v13, %s891_s12 }
  0x9c   : > { %v340_v14 = vpop.f32.mrf.mxu0 }
  0xa4   : > { %v343_v15 = vpop.f32.mrf.mxu0 }
  0xa5   : > { %v863_v16 = vpack.i.bf16 %v340_v14, %v343_v15 }
  0xa7   : > { %864 = vrot.lane.b32.xlu2 %v863_v16, %s892_s13  ;;  %849 = vrot.lane.b32.xlu0 %v863_v16, %s893_s14 }
  0xac   : > { %v346_v17 = vpop.f32.mrf.mxu0 }
  0xb4   : > { %v349_v18 = vpop.f32.mrf.mxu0 }
  0xb5   : > { %v868_v19 = vpack.i.bf16 %v346_v17, %v349_v18 }
  0xb7   : > { %869 = vrot.lane.b32.xlu2 %v868_v19, %s894_s15  ;;  %854 = vrot.lane.b32.xlu0 %v868_v19, %s895_s16 }
  0xbc   : > { %v352_v20 = vpop.f32.mrf.mxu0 }
  0xbd   : > { %v873_v21 = vpack.i.bf16 %v352_v20, %v355_v11  ;;  %v858_v22 = vpack.i.bf16 %v334_v10, %v352_v20 }
  0xbf   : > { %874 = vrot.lane.b32.xlu0 %v873_v21, %s896_s17  ;;  %859 = vrot.lane.b32.xlu1 %v858_v22, %s891_s12 }
  0xc7   : > { %517 = vrot.lane.b32.xlu0 %v486_v47, %s892_s13 }
  0xcf   : > { %493 = vrot.lane.b32.xlu0 %v487_v60, %s892_s13 }
 0x101   : > { %v865_v24 = vpop.permute.xlu2 %864 }
 0x102   : > { %v866_v34 = vunpack.i.l.bf16 %v865_v24  ;;  %v867_v50 = vunpack.i.h.bf16 %v865_v24 }
 0x109   : > { %v845_v26 = vpop.permute.xlu1 %844 }
 0x10a   : > { %v846_v29 = vunpack.i.l.bf16 %v845_v26  ;;  %v847_v31 = vunpack.i.h.bf16 %v845_v26 }
 0x111   : > { %v870_v35 = vpop.permute.xlu2 %869 }
 0x112   : > { %v871_v40 = vunpack.i.l.bf16 %v870_v35  ;;  %v872_v53 = vunpack.i.h.bf16 %v870_v35 }
 0x119   : > { %v850_v23 = vpop.permute.xlu0 %849 }
 0x11a   : > { %v851_v25 = vunpack.i.l.bf16 %v850_v23  ;;  %v852_v36 = vunpack.i.h.bf16 %v850_v23 }
 0x11c   : > { %v409_v30 = vsel %vm292_vm0, %v337_v12, %v851_v25  ;;  %v408_v43 = vsel %vm292_vm0, %v334_v10, %v852_v36 }
 0x129   : > { %v855_v27 = vpop.permute.xlu0 %854 }
 0x12a   : > { %v856_v28 = vunpack.i.l.bf16 %v855_v27  ;;  %v857_v38 = vunpack.i.h.bf16 %v855_v27 }
 0x12c   : > { %v412_v32 = vsel %vm410_vm1, %v409_v30, %v856_v28  ;;  %v411_v48 = vsel %vm410_vm1, %v408_v43, %v857_v38 }
 0x12d   : > { %v415_v33 = vsel %vm413_vm2, %v412_v32, %v846_v29 }
 0x12e   : > { %v418_v37 = vsel %vm416_vm3, %v415_v33, %v847_v31 }
 0x12f   : > { %v421_v39 = vsel %vm419_vm4, %v418_v37, %v866_v34  ;;  %v533_v37 = vld [vmem:[%s1106_s3] sm:$0xff] }
 0x130   : > { %v424_v49 = vsel %vm422_vm5, %v421_v39, %v871_v40  ;;  %v534_v39 = vld [vmem:[%s1106_s3 + $0x8] sm:$0xff]  ;;  %v535_v40 = vld [vmem:[%s1106_s3 + $0x10] sm:$0xff] }
 0x131   : > { %v875_v41 = vpop.permute.xlu0 %874  ;;  %v860_v42 = vpop.permute.xlu1 %859 }
 0x132   : > { %v876_v44 = vunpack.i.l.bf16 %v875_v41  ;;  %v862_v45 = vunpack.i.h.bf16 %v860_v42  ;;  %v861_v46 = vunpack.i.l.bf16 %v860_v42  ;;  %v877_v55 = vunpack.i.h.bf16 %v875_v41  ;;  %v536_v41 = vld [vmem:[%s1106_s3 + $0x18] sm:$0xff] }
 0x134   : > { %v414_v51 = vsel %vm413_vm2, %v411_v48, %v861_v46  ;;  %v427_v52 = vsel %vm425_vm6, %v424_v49, %v876_v44 }
 0x135   : > { %v417_v54 = vsel %vm416_vm3, %v414_v51, %v862_v45  ;;  %458 = vmatpush.msra.mxu1 %v427_v52  ;;  %v657_v52 = vld [vmem:[%s1107_s4 + $0x18] sm:$0xff] }
 0x136   : > { %v420_v56 = vsel %vm419_vm4, %v417_v54, %v867_v50  ;;  %824 = vmatpush.msra.mxu3 %v657_v52  ;;  %v655_v54 = vld [vmem:[%s1107_s4 + $0x8] sm:$0xff] }
 0x137   : > { %v423_v57 = vsel %vm422_vm5, %v420_v56, %v872_v53  ;;  %v656_v53 = vld [vmem:[%s1107_s4 + $0x10] sm:$0xff] }
 0x138   : > { %v426_v59 = vsel %vm425_vm6, %v423_v57, %v877_v55  ;;  %825 = vmatpush.msra.mxu3 %v656_v53  ;;  %v654_v55 = vld [vmem:[%s1107_s4] sm:$0xff] }
 0x139   : > { %459 = vmatpush.msra.mxu1 %v426_v59  ;;  %v518_v7 = vpop.permute.xlu0 %517 }
 0x13a   : > { %804 = vmatmul.msk.f32.vlgmr.msra.gmra.mxu1 %vm292_vm0, %v428_v58  ;;  %826 = vmatpush.msra.mxu3 %v655_v54 }
 0x13b   : > { %694 = vmatpush.msrb.mxu1 %v657_v52 }
 0x13c   : > { %827 = vmatpush.msra.mxu3 %v654_v55 }
 0x13d   : > { %695 = vmatpush.msrb.mxu1 %v656_v53 }
 0x13f   : > { %696 = vmatpush.msrb.mxu1 %v655_v54 }
 0x141   : > { %v494_v14 = vpop.permute.xlu0 %493  ;;  %697 = vmatpush.msrb.mxu1 %v654_v55 }
 0x142   : > { %805 = vmatmul.msk.f32.gmra.mxu1 %vm292_vm0, %v429_v61 }
 0x14a   : > { %806 = vmatmul.msk.f32.gmra.mxu1 %vm292_vm0, %v430_v62 }
 0x152   : > { %807 = vmatmul.msk.f32.gmra.mxu1 %vm292_vm0, %v431_v63 }
 0x1b7   : > { %v461_v0 = vpop.f32.mrf.mxu1 }
 0x1bf   : > { %v464_v1 = vpop.f32.mrf.mxu1 }
 0x1c7   : > { %v467_v2 = vpop.f32.mrf.mxu1 }
 0x1c8   : > { %475 = vrot.lane.b32.xlu2 %v467_v2, %s892_s13 }
 0x1cf   : > { %v470_v4 = vpop.f32.mrf.mxu1 }
 0x1d0   : > { %477 = vrot.lane.b32.xlu1 %v470_v4, %s892_s13  ;;  %495 = vrot.lane.b32.xlu2 %v488_v3, %s892_s13 }
 0x1d8   : > { %515 = vrot.lane.b32.xlu1 %v485_v5, %s892_s13 }
 0x222   : > { %v476_v6 = vpop.permute.xlu2 %475 }
 0x223   : > { %v483_v13 = vadd.f32 %v476_v6, %v461_v0  ;;  %v481_v18 = vsub.f32 %v461_v0, %v476_v6 }
 0x225   : > { %v499_v17 = vmul.f32 %v494_v14, %v483_v13  ;;  %v511_v21 = vmul.f32 %v487_v60, %v481_v18  ;;  %v489_v32 = vmul.f32 %v485_v5, %v481_v18 }
 0x22a   : > { %v496_v9 = vpop.permute.xlu2 %495 }
 0x242   : > { %v478_v8 = vpop.permute.xlu1 %477 }
 0x243   : > { %v484_v10 = vadd.f32 %v478_v8, %v464_v1  ;;  %v482_v19 = vsub.f32 %v464_v1, %v478_v8 }
 0x245   : > { %v522_v11 = vmul.f32 %v518_v7, %v484_v10  ;;  %v500_v12 = vmul.f32 %v496_v9, %v484_v10  ;;  %v512_v22 = vmul.f32 %v488_v3, %v482_v19  ;;  %v490_v28 = vmul.f32 %v486_v47, %v482_v19 }
 0x247   : > { %527 = vrot.lane.b32.xlu1 %v522_v11, %s892_s13  ;;  %505 = vrot.lane.b32.xlu0 %v500_v12, %s892_s13 }
 0x24a   : > { %v516_v15 = vpop.permute.xlu1 %515 }
 0x24b   : > { %v521_v16 = vmul.f32 %v516_v15, %v483_v13 }
 0x24d   : > { %525 = vrot.lane.b32.xlu2 %v521_v16, %s892_s13 }
 0x24f   : > { %503 = vrot.lane.b32.xlu1 %v499_v17, %s892_s13 }
 0x2a7   : > { %v526_v20 = vpop.permute.xlu2 %525 }
 0x2a8   : > { %v531_v24 = vadd.f32 %v526_v20, %v511_v21 }
 0x2b9   : > { %v528_v23 = vpop.permute.xlu1 %527  ;;  %v506_v27 = vpop.permute.xlu0 %505 }
 0x2ba   : > { %v532_v25 = vadd.f32 %v528_v23, %v512_v22  ;;  %v510_v31 = vsub.f32 %v490_v28, %v506_v27 }
 0x2bc   : > { %v878_v26 = vpack.i.bf16 %v531_v24, %v532_v25 }
 0x2be   : > { %879 = vrot.lane.b32.xlu2 %v878_v26, %s892_s13 }
 0x2c1   : > { %v504_v29 = vpop.permute.xlu1 %503 }
 0x2c2   : > { %v509_v35 = vsub.f32 %v489_v32, %v504_v29 }
 0x318   : > { %v880_v30 = vpop.permute.xlu2 %879 }
 0x319   : > { %v882_v33 = vunpack.i.h.bf16 %v880_v30  ;;  %v881_v34 = vunpack.i.l.bf16 %v880_v30 }
 0x31b   : > { %v546_v36 = vsel %vm416_vm3, %v510_v31, %v881_v34  ;;  %v545_v38 = vsel %vm416_vm3, %v509_v35, %v882_v33 }
 0x31c   : > { %573 = vmatpush.msrb.mxu2 %v546_v36 }
 0x31e   : > { %574 = vmatpush.msrb.mxu2 %v545_v38 }
 0x31f   : > { %808 = vmatmul.msk.f32.vlgmr.msrb.gmra.mxu2 %vm292_vm0, %v533_v37 }
 0x327   : > { %809 = vmatmul.msk.f32.gmra.mxu2 %vm292_vm0, %v534_v39 }
 0x32f   : > { %810 = vmatmul.msk.f32.gmra.mxu2 %vm292_vm0, %v535_v40 }
 0x337   : > { %811 = vmatmul.msk.f32.gmra.mxu2 %vm292_vm0, %v536_v41 }
 0x3a2   : > { %v576_v42 = vpop.f32.mrf.mxu2 }
 0x3aa   : > { %v579_v43 = vpop.f32.mrf.mxu2 }
 0x3b2   : > { %v582_v44 = vpop.f32.mrf.mxu2 }
 0x3b3   : > { %590 = vrot.lane.b32.xlu0 %v582_v44, %s892_s13 }
 0x3ba   : > { %v585_v45 = vpop.f32.mrf.mxu2 }
 0x3bb   : > { %592 = vrot.lane.b32.xlu1 %v585_v45, %s892_s13 }
 0x425   : > { %v591_v46 = vpop.permute.xlu0 %590 }
 0x426   : > { %v596_v47 = vsub.f32 %v576_v42, %v591_v46  ;;  %v598_v48 = vadd.f32 %v591_v46, %v576_v42 }
 0x428   : > { %618 = vrot.lane.b32.xlu0 %v598_v48, %s892_s13  ;;  %612 = vrot.lane.b32.xlu2 %v596_v47, %s897_s28 }
 0x42d   : > { %v593_v49 = vpop.permute.xlu1 %592 }
 0x42e   : > { %v597_v50 = vsub.f32 %v579_v43, %v593_v49  ;;  %v599_v51 = vadd.f32 %v593_v49, %v579_v43 }
 0x430   : > { %626 = vrot.lane.b32.xlu0 %v596_v47, %s896_s17  ;;  %620 = vrot.lane.b32.xlu2 %v599_v51, %s892_s13 }
 0x431   : > { %614 = vrot.lane.b32.xlu1 %v597_v50, %s897_s28 }
 0x438   : > { %634 = vrot.lane.b32.xlu0 %v599_v51, %s891_s12  ;;  %628 = vrot.lane.b32.xlu2 %v597_v50, %s896_s17 }
 0x439   : > { %632 = vrot.lane.b32.xlu1 %v598_v48, %s891_s12 }
 0x440   : > { %602 = vrot.lane.b32.xlu0 %v598_v48, %s894_s15  ;;  %646 = vrot.lane.b32.xlu2 %v598_v48, %s895_s16 }
 0x441   : > { %640 = vrot.lane.b32.xlu1 %v596_v47, %s894_s15 }
 0x448   : > { %604 = vrot.lane.b32.xlu0 %v599_v51, %s894_s15  ;;  %648 = vrot.lane.b32.xlu2 %v599_v51, %s895_s16 }
 0x449   : > { %642 = vrot.lane.b32.xlu1 %v597_v50, %s894_s15 }
 0x482   : > { %v613_v56 = vpop.permute.xlu2 %612 }
 0x48a   : > { %v621_v60 = vpop.permute.xlu2 %620 }
 0x492   : > { %v629_v2 = vpop.permute.xlu2 %628 }
 0x49a   : > { %v619_v57 = vpop.permute.xlu0 %618  ;;  %v647_v7 = vpop.permute.xlu2 %646 }
 0x49b   : > { %v624_v58 = vsel %vm292_vm0, %v613_v56, %v619_v57 }
 0x49c   : > { %814 = vmatmul.msk.f32.vlgmr.msra.gmra.mxu3 %vm410_vm1, %v624_v58 }
 0x4a2   : > { %v627_v59 = vpop.permute.xlu0 %626  ;;  %v649_v12 = vpop.permute.xlu2 %648 }
 0x4a3   : > { %v615_v61 = vpop.permute.xlu1 %614 }
 0x4a4   : > { %v625_v62 = vsel %vm292_vm0, %v615_v61, %v621_v60 }
 0x4a5   : > { %815 = vmatmul.msk.f32.gmra.mxu3 %vm410_vm1, %v625_v62 }
 0x4aa   : > { %v635_v63 = vpop.permute.xlu0 %634 }
 0x4ab   : > { %v633_v0 = vpop.permute.xlu1 %632  ;;  %v639_v5 = vsel %vm292_vm0, %v629_v2, %v635_v63 }
 0x4ac   : > { %v638_v1 = vsel %vm292_vm0, %v627_v59, %v633_v0 }
 0x4ad   : > { %816 = vmatmul.msk.f32.gmra.mxu3 %vm410_vm1, %v638_v1 }
 0x4b2   : > { %v603_v3 = vpop.permute.xlu0 %602 }
 0x4b3   : > { %v608_v4 = vsel %vm292_vm0, %v596_v47, %v603_v3  ;;  %v641_v6 = vpop.permute.xlu1 %640 }
 0x4b4   : > { %812 = vmatmul.msk.f32.vlgmr.msrb.gmra.mxu1 %vm410_vm1, %v608_v4  ;;  %v652_v10 = vsel %vm292_vm0, %v641_v6, %v647_v7 }
 0x4b5   : > { %817 = vmatmul.msk.f32.gmra.mxu3 %vm410_vm1, %v639_v5 }
 0x4ba   : > { %v605_v8 = vpop.permute.xlu0 %604 }
 0x4bb   : > { %v609_v9 = vsel %vm292_vm0, %v597_v50, %v605_v8  ;;  %v643_v11 = vpop.permute.xlu1 %642 }
 0x4bc   : > { %813 = vmatmul.msk.f32.gmra.mxu1 %vm410_vm1, %v609_v9  ;;  %v653_v13 = vsel %vm292_vm0, %v643_v11, %v649_v12 }
 0x4bd   : > { %818 = vmatmul.msk.f32.gmra.mxu3 %vm410_vm1, %v652_v10 }
 0x4c5   : > { %819 = vmatmul.msk.f32.gmra.mxu3 %vm410_vm1, %v653_v13 }
 0x51f   : > { %v705_v14 = vpop.f32.mrf.mxu3 }
 0x520   : > { %725 = vst.msk [vmem:[%s280_s18 + $0x10] sm:$0xff] %vm292_vm0, %v705_v14 }
 0x528   : > { %v708_v15 = vpop.f32.mrf.mxu3 }
 0x529   : > { %726 = vst.msk [vmem:[%s280_s18 + $0x18] sm:$0xff] %vm292_vm0, %v708_v15 }
 0x530   : > { %v711_v16 = vpop.f32.mrf.mxu3 }
 0x531   : > { %727 = vst.msk [vmem:[%s280_s18 + $0x20] sm:$0xff] %vm292_vm0, %v711_v16  ;;  %v699_v17 = vpop.f32.mrf.mxu1 }
 0x532   : > { %723 = vst.msk [vmem:[%s280_s18] sm:$0xff] %vm292_vm0, %v699_v17 }
 0x538   : > { %v714_v18 = vpop.f32.mrf.mxu3 }
 0x539   : > { %728 = vst.msk [vmem:[%s280_s18 + $0x28] sm:$0xff] %vm292_vm0, %v714_v18  ;;  %v702_v19 = vpop.f32.mrf.mxu1 }
 0x53a   : > { %724 = vst.msk [vmem:[%s280_s18 + $0x8] sm:$0xff] %vm292_vm0, %v702_v19 }
 0x540   : > { %v717_v20 = vpop.f32.mrf.mxu3 }
 0x541   : > { %729 = vst.msk [vmem:[%s280_s18 + $0x30] sm:$0xff] %vm292_vm0, %v717_v20 }
 0x548   : > { %v720_v21 = vpop.f32.mrf.mxu3 }
 0x549   : > { %730 = vst.msk [vmem:[%s280_s18 + $0x38] sm:$0xff] %vm292_vm0, %v720_v21 }
 0x54a PF: > { %s17_s24 = sadd.s32 1, %s889_s24  }
 0x54b   : > { %p14_p4 = scmp.ge.s32.totalorder %s17_s24, 4  }
 0x54d   :  { %16 = sbr.rel (!%p14_p4) target bundleno = 1 (0x1), region = 78 }

</bundles_post_ra>
